<compile_context>
chip_gen: v7x
topology: tpu7x:2x2x1
jax: 0.10.0
libtpu: 0.0.40
codegen_flags: <defaults>
</compile_context>

<pallas_src>
import functools

import jax
import jax.numpy as jnp
from jax.experimental import pallas as pl
from jax.experimental.pallas import tpu as pltpu

# --- config (mirrors the PyTorch script: D input dim, M cell_dim, L latent) ---
D = 64        # input dim
M = 32        # cell_dim
L = 8         # latent_dim
B = 8         # batch (small demo shape)

_NEG_SLOPE = 0.01      # nn.LeakyReLU default negative_slope
_OUT_W = 128           # lane-dense packed output width (z: lanes 0:L, logp: lane L)


def _leaky_relu(x):
    return jnp.where(x > 0, x, _NEG_SLOPE * x)


def _round_up(n, m):
    return ((n + m - 1) // m) * m


def encoder_kernel(x_ref, w1_ref, b1_ref, w2_ref, b2_ref,
                   w3m_ref, b3m_ref, w3v_ref, b3v_ref, eps_ref, out_ref):
    # hot path: 4 small matmuls (MXU) + LeakyReLU (VPU) + exp (EUP) + row reductions
    x = x_ref[...]                                                      # (TB, D)

    h = _leaky_relu(jnp.dot(x, w1_ref[...],
                            preferred_element_type=jnp.float32) + b1_ref[...])   # (TB, M)
    h = _leaky_relu(jnp.dot(h, w2_ref[...],
                            preferred_element_type=jnp.float32) + b2_ref[...])   # (TB, M)

    # Split head: two small matmuls keep mu / log_var lane-aligned from the
    # start (no unaligned lane slice of a (TB, 2L) result).
    mu = jnp.dot(h, w3m_ref[...], preferred_element_type=jnp.float32) + b3m_ref[...]
    log_var = jnp.dot(h, w3v_ref[...], preferred_element_type=jnp.float32) + b3v_ref[...]

    eps = eps_ref[...]                                                  # (TB, L)
    std = jnp.exp(0.5 * log_var)
    z = mu + std * eps                                                  # use_rep=True

    # log_normal_diagonal(z, mu, log_var); (z - mu)^2 / exp(log_var) == eps^2
    # exactly, which removes an exp and a divide from the reduction path.
    lat = eps.shape[1]
    log_2pi = jnp.log(jnp.float32(2.0 * jnp.pi))
    log_p = (-0.5 * lat * log_2pi
             - 0.5 * jnp.sum(log_var, axis=-1, keepdims=True)
             - 0.5 * jnp.sum(eps * eps, axis=-1, keepdims=True))        # (TB, 1)

    # Lane-dense packed output slab -> unmasked 128-lane stores.
    tb = out_ref.shape[0]
    pad = out_ref.shape[1] - lat - 1
    out_ref[...] = jnp.concatenate(
        [z.astype(out_ref.dtype),
         log_p.astype(out_ref.dtype),
         jnp.zeros((tb, pad), out_ref.dtype)],
        axis=-1)


@functools.partial(jax.jit, static_argnames=("row_tile",))
def encoder_forward(x, params, eps, *, row_tile=1024):
    """x: (B, D) f32, eps: (B, L) f32 -> (z (B, L), log_p (B,))."""
    w1, b1, w2, b2, w3m, b3m, w3v, b3v = params
    b_in, d_in = x.shape
    lat = eps.shape[1]

    # Row tile: multiple of 8 sublanes, sized conservatively for v7x 64 MiB VMEM.
    tb = min(_round_up(b_in, 8), _round_up(row_tile, 8))
    b_pad = _round_up(b_in, tb)
    if b_pad != b_in:
        x = jnp.pad(x, ((0, b_pad - b_in), (0, 0)))
        eps = jnp.pad(eps, ((0, b_pad - b_in), (0, 0)))

    grid = (b_pad // tb,)
    const = lambda i: (0, 0)   # weights stay resident (no re-DMA per step)
    in_specs = [
        pl.BlockSpec((tb, d_in), lambda i: (i, 0)),       # x
        pl.BlockSpec(w1.shape, const), pl.BlockSpec(b1.shape, const),
        pl.BlockSpec(w2.shape, const), pl.BlockSpec(b2.shape, const),
        pl.BlockSpec(w3m.shape, const), pl.BlockSpec(b3m.shape, const),
        pl.BlockSpec(w3v.shape, const), pl.BlockSpec(b3v.shape, const),
        pl.BlockSpec((tb, lat), lambda i: (i, 0)),        # eps
    ]
    out_specs = pl.BlockSpec((tb, _OUT_W), lambda i: (i, 0))

    m_dim = w1.shape[1]
    flops = 2 * b_pad * (d_in * m_dim + m_dim * m_dim + 2 * m_dim * lat) \
            + 12 * b_pad * lat
    bytes_accessed = 4 * (x.size + eps.size + b_pad * _OUT_W
                          + w1.size + b1.size + w2.size + b2.size
                          + w3m.size + b3m.size + w3v.size + b3v.size)
    cost = pl.CostEstimate(flops=flops, transcendentals=b_pad * lat,
                           bytes_accessed=bytes_accessed)

    out = pl.pallas_call(
        encoder_kernel,
        out_shape=jax.ShapeDtypeStruct((b_pad, _OUT_W), jnp.float32),
        grid_spec=pltpu.PrefetchScalarGridSpec(
            num_scalar_prefetch=0,
            grid=grid,
            in_specs=in_specs,
            out_specs=out_specs,
        ),
        compiler_params=pltpu.CompilerParams(
            dimension_semantics=("parallel",)),
        cost_estimate=cost,
    )(x, w1, b1, w2, b2, w3m, b3m, w3v, b3v, eps)

    z = out[:b_in, :lat]
    log_p = out[:b_in, lat]
    return z, log_p


def init_params(key):
    """Deterministic synthetic parameters (shapes from nn.Sequential in __init__)."""
    ks = jax.random.split(key, 6)
    s1 = 1.0 / jnp.sqrt(D)
    s2 = 1.0 / jnp.sqrt(M)
    w1 = jax.random.uniform(ks[0], (D, M), jnp.float32, -s1, s1)
    b1 = jax.random.uniform(ks[1], (1, M), jnp.float32, -s1, s1)
    w2 = jax.random.uniform(ks[2], (M, M), jnp.float32, -s2, s2)
    b2 = jax.random.uniform(ks[3], (1, M), jnp.float32, -s2, s2)
    w3 = jax.random.uniform(ks[4], (M, 2 * L), jnp.float32, -s2, s2)
    b3 = jax.random.uniform(ks[5], (1, 2 * L), jnp.float32, -s2, s2)
    return (w1, b1, w2, b2, w3, b3)


def split_head(params):
    """Split the (M, 2L) head into mu / log_var halves for the kernel."""
    w1, b1, w2, b2, w3, b3 = params
    return (w1, b1, w2, b2, w3[:, :L], b3[:, :L], w3[:, L:], b3[:, L:])


def reference_forward(x, params, eps):
    """Pure-JAX reference matching the PyTorch forward semantics literally."""
    w1, b1, w2, b2, w3, b3 = params
    h = _leaky_relu(x @ w1 + b1)
    h = _leaky_relu(h @ w2 + b2)
    h = h @ w3 + b3
    mu, log_var = h[:, :L], h[:, L:]
    std = jnp.exp(0.5 * log_var)
    z = mu + std * eps
    log_p = (-0.5 * L * jnp.log(2.0 * jnp.pi)
             - 0.5 * jnp.sum(log_var, axis=-1)
             - 0.5 * jnp.sum((z - mu) ** 2 / jnp.exp(log_var), axis=-1))
    return z, log_p


if __name__ == "__main__":
    key = jax.random.PRNGKey(0)
    k_param, k_x, k_eps = jax.random.split(key, 3)

    params = init_params(k_param)
    x = jax.random.normal(k_x, (B, D), jnp.float32)
    eps = jax.random.normal(k_eps, (B, L), jnp.float32)

    z, log_p = encoder_forward(x, split_head(params), eps)
    jax.block_until_ready((z, log_p))

    z_ref, log_p_ref = reference_forward(x, params, eps)
    assert z.shape == (B, L) and log_p.shape == (B,)
    assert jnp.allclose(z, z_ref, atol=1e-5, rtol=1e-5)
    assert jnp.allclose(log_p, log_p_ref, atol=1e-4, rtol=1e-4)

    # TODO(synk): use_rep=False branch (torch.normal(mu, std)) not implemented;
    # RNG (torch.randn_like) is done in the wrapper via jax.random and eps is
    # passed in so the kernel stays deterministic.
    print("KERNEL_OK")
</pallas_src>

<mosaic_0001>
module attributes {stable_mosaic.version = 11 : i64} {
  func.func @encoder_kernel(%arg0: i32, %arg1: memref<8x64xf32, #tpu.memory_space<vmem>>, %arg2: memref<64x32xf32, #tpu.memory_space<vmem>>, %arg3: memref<1x32xf32, #tpu.memory_space<vmem>>, %arg4: memref<32x32xf32, #tpu.memory_space<vmem>>, %arg5: memref<1x32xf32, #tpu.memory_space<vmem>>, %arg6: memref<32x8xf32, #tpu.memory_space<vmem>>, %arg7: memref<1x8xf32, #tpu.memory_space<vmem>>, %arg8: memref<32x8xf32, #tpu.memory_space<vmem>>, %arg9: memref<1x8xf32, #tpu.memory_space<vmem>>, %arg10: memref<8x8xf32, #tpu.memory_space<vmem>>, %arg11: memref<8x128xf32, #tpu.memory_space<vmem>>) attributes {dimension_semantics = [#tpu.dimension_semantics<parallel>], iteration_bounds = array<i64: 1>, scalar_prefetch = 0 : i64, scratch_operands = 0 : i64, tpu.core_type = #tpu.core_type<tc>, window_params = [{transform_indices = @transform_0, window_bounds = array<i64: 8, 64>}, {pipeline_mode = #tpu.pipeline_mode<synchronous>, transform_indices = @transform_1, window_bounds = array<i64: 64, 32>}, {pipeline_mode = #tpu.pipeline_mode<synchronous>, transform_indices = @transform_2, window_bounds = array<i64: 1, 32>}, {pipeline_mode = #tpu.pipeline_mode<synchronous>, transform_indices = @transform_3, window_bounds = array<i64: 32, 32>}, {pipeline_mode = #tpu.pipeline_mode<synchronous>, transform_indices = @transform_4, window_bounds = array<i64: 1, 32>}, {pipeline_mode = #tpu.pipeline_mode<synchronous>, transform_indices = @transform_5, window_bounds = array<i64: 32, 8>}, {pipeline_mode = #tpu.pipeline_mode<synchronous>, transform_indices = @transform_6, window_bounds = array<i64: 1, 8>}, {pipeline_mode = #tpu.pipeline_mode<synchronous>, transform_indices = @transform_7, window_bounds = array<i64: 32, 8>}, {pipeline_mode = #tpu.pipeline_mode<synchronous>, transform_indices = @transform_8, window_bounds = array<i64: 1, 8>}, {transform_indices = @transform_9, window_bounds = array<i64: 8, 8>}, {transform_indices = @transform_10, window_bounds = array<i64: 8, 128>}]} {
    %c0 = arith.constant 0 : index
    %c0_0 = arith.constant 0 : index
    %0 = vector.load %arg1[%c0, %c0_0] : memref<8x64xf32, #tpu.memory_space<vmem>>, vector<8x64xf32>
    %c0_1 = arith.constant 0 : index
    %c0_2 = arith.constant 0 : index
    %1 = vector.load %arg2[%c0_1, %c0_2] : memref<64x32xf32, #tpu.memory_space<vmem>>, vector<64x32xf32>
    %cst = arith.constant dense<0.000000e+00> : vector<8x32xf32>
    %2 = tpu.matmul %0, %1, %cst {dimension_numbers = #tpu.dot_dimension_numbers<[1], [0], [0], [1], [0, 0, 1, 1], [], []>} : vector<8x64xf32>, vector<64x32xf32>, vector<8x32xf32> -> vector<8x32xf32>
    %c0_3 = arith.constant 0 : index
    %c0_4 = arith.constant 0 : index
    %3 = vector.load %arg3[%c0_3, %c0_4] : memref<1x32xf32, #tpu.memory_space<vmem>>, vector<1x32xf32>
    %4 = vector.broadcast %3 : vector<1x32xf32> to vector<8x32xf32>
    %5 = arith.addf %2, %4 : vector<8x32xf32>
    %cst_5 = arith.constant 0.000000e+00 : f32
    %6 = vector.broadcast %cst_5 : f32 to vector<8x32xf32>
    %7 = arith.cmpf ogt, %5, %6 : vector<8x32xf32>
    %cst_6 = arith.constant 0.00999999977 : f32
    %8 = vector.broadcast %cst_6 : f32 to vector<8x32xf32>
    %9 = arith.mulf %8, %5 : vector<8x32xf32>
    %10 = arith.select %7, %5, %9 : vector<8x32xi1>, vector<8x32xf32>
    %c0_7 = arith.constant 0 : index
    %c0_8 = arith.constant 0 : index
    %11 = vector.load %arg4[%c0_7, %c0_8] : memref<32x32xf32, #tpu.memory_space<vmem>>, vector<32x32xf32>
    %cst_9 = arith.constant dense<0.000000e+00> : vector<8x32xf32>
    %12 = tpu.matmul %10, %11, %cst_9 {dimension_numbers = #tpu.dot_dimension_numbers<[1], [0], [0], [1], [0, 0, 1, 1], [], []>} : vector<8x32xf32>, vector<32x32xf32>, vector<8x32xf32> -> vector<8x32xf32>
    %c0_10 = arith.constant 0 : index
    %c0_11 = arith.constant 0 : index
    %13 = vector.load %arg5[%c0_10, %c0_11] : memref<1x32xf32, #tpu.memory_space<vmem>>, vector<1x32xf32>
    %14 = vector.broadcast %13 : vector<1x32xf32> to vector<8x32xf32>
    %15 = arith.addf %12, %14 : vector<8x32xf32>
    %cst_12 = arith.constant 0.000000e+00 : f32
    %16 = vector.broadcast %cst_12 : f32 to vector<8x32xf32>
    %17 = arith.cmpf ogt, %15, %16 : vector<8x32xf32>
    %cst_13 = arith.constant 0.00999999977 : f32
    %18 = vector.broadcast %cst_13 : f32 to vector<8x32xf32>
    %19 = arith.mulf %18, %15 : vector<8x32xf32>
    %20 = arith.select %17, %15, %19 : vector<8x32xi1>, vector<8x32xf32>
    %c0_14 = arith.constant 0 : index
    %c0_15 = arith.constant 0 : index
    %21 = vector.load %arg6[%c0_14, %c0_15] : memref<32x8xf32, #tpu.memory_space<vmem>>, vector<32x8xf32>
    %cst_16 = arith.constant dense<0.000000e+00> : vector<8x8xf32>
    %22 = tpu.matmul %20, %21, %cst_16 {dimension_numbers = #tpu.dot_dimension_numbers<[1], [0], [0], [1], [0, 0, 1, 1], [], []>} : vector<8x32xf32>, vector<32x8xf32>, vector<8x8xf32> -> vector<8x8xf32>
    %c0_17 = arith.constant 0 : index
    %c0_18 = arith.constant 0 : index
    %23 = vector.load %arg7[%c0_17, %c0_18] : memref<1x8xf32, #tpu.memory_space<vmem>>, vector<1x8xf32>
    %24 = vector.broadcast %23 : vector<1x8xf32> to vector<8x8xf32>
    %25 = arith.addf %22, %24 : vector<8x8xf32>
    %c0_19 = arith.constant 0 : index
    %c0_20 = arith.constant 0 : index
    %26 = vector.load %arg8[%c0_19, %c0_20] : memref<32x8xf32, #tpu.memory_space<vmem>>, vector<32x8xf32>
    %cst_21 = arith.constant dense<0.000000e+00> : vector<8x8xf32>
    %27 = tpu.matmul %20, %26, %cst_21 {dimension_numbers = #tpu.dot_dimension_numbers<[1], [0], [0], [1], [0, 0, 1, 1], [], []>} : vector<8x32xf32>, vector<32x8xf32>, vector<8x8xf32> -> vector<8x8xf32>
    %c0_22 = arith.constant 0 : index
    %c0_23 = arith.constant 0 : index
    %28 = vector.load %arg9[%c0_22, %c0_23] : memref<1x8xf32, #tpu.memory_space<vmem>>, vector<1x8xf32>
    %29 = vector.broadcast %28 : vector<1x8xf32> to vector<8x8xf32>
    %30 = arith.addf %27, %29 : vector<8x8xf32>
    %c0_24 = arith.constant 0 : index
    %c0_25 = arith.constant 0 : index
    %31 = vector.load %arg10[%c0_24, %c0_25] : memref<8x8xf32, #tpu.memory_space<vmem>>, vector<8x8xf32>
    %cst_26 = arith.constant 5.000000e-01 : f32
    %32 = vector.broadcast %cst_26 : f32 to vector<8x8xf32>
    %33 = arith.mulf %32, %30 : vector<8x8xf32>
    %34 = math.exp %33 : vector<8x8xf32>
    %35 = arith.mulf %34, %31 : vector<8x8xf32>
    %36 = arith.addf %25, %35 : vector<8x8xf32>
    %cst_27 = arith.constant 6.28318548 : f32
    %37 = math.log %cst_27 : f32
    %cst_28 = arith.constant -4.000000e+00 : f32
    %38 = arith.mulf %cst_28, %37 : f32
    %cst_29 = arith.constant dense<0.000000e+00> : vector<8xf32>
    %39 = vector.multi_reduction <add>, %30, %cst_29 [1] : vector<8x8xf32> to vector<8xf32>
    %40 = vector.shape_cast %39 : vector<8xf32> to vector<8x1xf32>
    %cst_30 = arith.constant 5.000000e-01 : f32
    %41 = vector.broadcast %cst_30 : f32 to vector<8x1xf32>
    %42 = arith.mulf %41, %40 : vector<8x1xf32>
    %43 = vector.broadcast %38 : f32 to vector<8x1xf32>
    %44 = arith.subf %43, %42 : vector<8x1xf32>
    %45 = arith.mulf %31, %31 : vector<8x8xf32>
    %cst_31 = arith.constant dense<0.000000e+00> : vector<8xf32>
    %46 = vector.multi_reduction <add>, %45, %cst_31 [1] : vector<8x8xf32> to vector<8xf32>
    %47 = vector.shape_cast %46 : vector<8xf32> to vector<8x1xf32>
    %cst_32 = arith.constant 5.000000e-01 : f32
    %48 = vector.broadcast %cst_32 : f32 to vector<8x1xf32>
    %49 = arith.mulf %48, %47 : vector<8x1xf32>
    %50 = arith.subf %44, %49 : vector<8x1xf32>
    %cst_33 = arith.constant 0.000000e+00 : f32
    %51 = vector.broadcast %cst_33 : f32 to vector<8x119xf32>
    %52 = tpu.concatenate %36, %50, %51 in 1 : vector<8x8xf32>, vector<8x1xf32>, vector<8x119xf32> -> vector<8x128xf32>
    %c0_34 = arith.constant 0 : index
    %c0_35 = arith.constant 0 : index
    %53 = vector.load %arg11[%c0_34, %c0_35] : memref<8x128xf32, #tpu.memory_space<vmem>>, vector<8x128xf32>
    tpu.vector_store %arg11[%c0_34, %c0_35], %52 {strides = array<i32>} : memref<8x128xf32, #tpu.memory_space<vmem>>, vector<8x128xf32>,
    return
  }
  func.func @transform_0(%arg0: i32) -> (i32, i32) {
    %c0_i32 = arith.constant 0 : i32
    %c0_i32_0 = arith.constant 0 : i32
    return %arg0, %c0_i32 : i32, i32
  }
  func.func @transform_1(%arg0: i32) -> (i32, i32) {
    %c0_i32 = arith.constant 0 : i32
    %c0_i32_0 = arith.constant 0 : i32
    %c0_i32_1 = arith.constant 0 : i32
    return %c0_i32, %c0_i32_0 : i32, i32
  }
  func.func @transform_2(%arg0: i32) -> (i32, i32) {
    %c0_i32 = arith.constant 0 : i32
    %c0_i32_0 = arith.constant 0 : i32
    %c0_i32_1 = arith.constant 0 : i32
    return %c0_i32, %c0_i32_0 : i32, i32
  }
  func.func @transform_3(%arg0: i32) -> (i32, i32) {
    %c0_i32 = arith.constant 0 : i32
    %c0_i32_0 = arith.constant 0 : i32
    %c0_i32_1 = arith.constant 0 : i32
    return %c0_i32, %c0_i32_0 : i32, i32
  }
  func.func @transform_4(%arg0: i32) -> (i32, i32) {
    %c0_i32 = arith.constant 0 : i32
    %c0_i32_0 = arith.constant 0 : i32
    %c0_i32_1 = arith.constant 0 : i32
    return %c0_i32, %c0_i32_0 : i32, i32
  }
  func.func @transform_5(%arg0: i32) -> (i32, i32) {
    %c0_i32 = arith.constant 0 : i32
    %c0_i32_0 = arith.constant 0 : i32
    %c0_i32_1 = arith.constant 0 : i32
    return %c0_i32, %c0_i32_0 : i32, i32
  }
  func.func @transform_6(%arg0: i32) -> (i32, i32) {
    %c0_i32 = arith.constant 0 : i32
    %c0_i32_0 = arith.constant 0 : i32
    %c0_i32_1 = arith.constant 0 : i32
    return %c0_i32, %c0_i32_0 : i32, i32
  }
  func.func @transform_7(%arg0: i32) -> (i32, i32) {
    %c0_i32 = arith.constant 0 : i32
    %c0_i32_0 = arith.constant 0 : i32
    %c0_i32_1 = arith.constant 0 : i32
    return %c0_i32, %c0_i32_0 : i32, i32
  }
  func.func @transform_8(%arg0: i32) -> (i32, i32) {
    %c0_i32 = arith.constant 0 : i32
    %c0_i32_0 = arith.constant 0 : i32
    %c0_i32_1 = arith.constant 0 : i32
    return %c0_i32, %c0_i32_0 : i32, i32
  }
  func.func @transform_9(%arg0: i32) -> (i32, i32) {
    %c0_i32 = arith.constant 0 : i32
    %c0_i32_0 = arith.constant 0 : i32
    return %arg0, %c0_i32 : i32, i32
  }
  func.func @transform_10(%arg0: i32) -> (i32, i32) {
    %c0_i32 = arith.constant 0 : i32
    %c0_i32_0 = arith.constant 0 : i32
    return %arg0, %c0_i32 : i32, i32
  }
}

</mosaic_0001>

<bundles_post_ra>
// kernel: encoder_forward.1
= control target key start
LH: loop header
LB: loop body
LE: loop exit
PB: predicated region body
PF: predicated region fallthrough
CT: control target
= control target key end

     0   :  { %v526_v0 = vmov 0.0|0.0   ;;  %vm527_vm0 = vmmov 0   ;;  %v528_v4 = vmov 0.0   ;;  %vm51_vm1 = vcmask 523264   ;;  %s685_s1 = inlined_call_operand.vmem [shape: f32[64,32], index: 1, kind: input, shape index: {}]   ;;  %s686_s3 = inlined_call_operand.vmem [shape: f32[32,32], index: 3, kind: input, shape index: {}]   ;;  %s687_s0 = inlined_call_operand.vmem [shape: f32[8,64], index: 0, kind: input, shape index: {}]   ;;  %s688_s7 = inlined_call_operand.vmem [shape: f32[32,8], index: 7, kind: input, shape index: {}]   ;;  %s689_s2 = inlined_call_operand.vmem [shape: f32[1,32], index: 2, kind: input, shape index: {}]   ;;  %s690_s5 = inlined_call_operand.vmem [shape: f32[32,8], index: 5, kind: input, shape index: {}]   ;;  %s691_s4 = inlined_call_operand.vmem [shape: f32[1,32], index: 4, kind: input, shape index: {}]   ;;  %s692_s8 = inlined_call_operand.vmem [shape: f32[1,8], index: 8, kind: input, shape index: {}]   ;;  %s693_s9 = inlined_call_operand.vmem [shape: f32[8,8], index: 9, kind: input, shape index: {}]   ;;  %s694_s6 = inlined_call_operand.vmem [shape: f32[1,8], index: 6, kind: input, shape index: {}]   ;;  %s695_s10 = inlined_call_operand.vmem [shape: f32[8,128], index: 10, kind: output, shape index: {}]  }
   0x1   :  { %491 = vmatprep.subr.bf16.mxu0 %v526_v0  ;;  %v36_v1 = vld [vmem:[%s685_s1] sm:$0xff]  ;;  %v37_v2 = vld [vmem:[%s685_s1 + $0x8] sm:$0xff]  ;;  %v38_v3 = vld [vmem:[%s685_s1 + $0x10] sm:$0xff]  ;;  %455 = vmatprep.mubr.msk.f32.mxu0 %vm527_vm0, %v528_v4  ;;  %vm139_vm3 = vcmask 261120   ;;  %vm387_vm5 = vcmask 64512   ;;  %vm400_vm6 = vcmask 72704  }
   0x2   :  { %v492_v5 = vpack.c.bf16 %v37_v2, %v36_v1  ;;  %v39_v6 = vld [vmem:[%s685_s1 + $0x18] sm:$0xff]  ;;  %503 = vmatprep.subr.bf16.mxu1 %v526_v0  ;;  %466 = vmatprep.mubr.msk.f32.mxu1 %vm527_vm0, %v528_v4  ;;  %v128_v8 = vld [vmem:[%s686_s3] sm:$0xff]  ;;  %v129_v9 = vld [vmem:[%s686_s3 + $0x8] sm:$0xff] }
   0x3   :  { %v495_v7 = vpack.c.bf16 %v39_v6, %v38_v3  ;;  %v40_v10 = vld [vmem:[%s685_s1 + $0x20] sm:$0xff]  ;;  %v41_v11 = vld [vmem:[%s685_s1 + $0x28] sm:$0xff]  ;;  %v504_v12 = vpack.c.bf16 %v129_v9, %v128_v8  ;;  %v42_v14 = vld [vmem:[%s685_s1 + $0x30] sm:$0xff] }
   0x4   :  { %493 = vmatpush3.bf16.msra.mxu0 %v492_v5  ;;  %v498_v13 = vpack.c.bf16 %v41_v11, %v40_v10  ;;  %v43_v15 = vld [vmem:[%s685_s1 + $0x38] sm:$0xff]  ;;  %v35_v17 = vld [vmem:[%s687_s0] sm:$0xff]  ;;  %v130_v18 = vld [vmem:[%s686_s3 + $0x10] sm:$0xff] }
   0x5   :  { %494 = vmatprep.subr.bf16.mxu0 %v526_v0  ;;  %505 = vmatpush3.bf16.msra.mxu1 %v504_v12  ;;  %v501_v16 = vpack.c.bf16 %v43_v15, %v42_v14  ;;  %v131_v19 = vld [vmem:[%s686_s3 + $0x18] sm:$0xff]  ;;  %v300_v21 = vld [vmem:[%s688_s7] sm:$0xff]  ;;  %v301_v22 = vld [vmem:[%s688_s7 + $0x8] sm:$0xff] }
   0x6   :  { %506 = vmatprep.subr.bf16.mxu1 %v526_v0  ;;  %v507_v20 = vpack.c.bf16 %v131_v19, %v130_v18  ;;  %v516_v23 = vpack.c.bf16 %v301_v22, %v300_v21  ;;  %v407_v24 = vld [vmem:[%s689_s2] ss:$0 sm:$0xff]  ;;  %v217_v27 = vld [vmem:[%s690_s5 + $0x8] sm:$0xff]  ;;  %v218_v33 = vld [vmem:[%s690_s5 + $0x10] sm:$0xff] }
   0x7   :  { %v216_v26 = vld [vmem:[%s690_s5] sm:$0xff]  ;;  %v219_v34 = vld [vmem:[%s690_s5 + $0x18] sm:$0xff]  ;;  %v302_v35 = vld [vmem:[%s688_s7 + $0x10] sm:$0xff] }
   0x8   :  { %496 = vmatpush3.bf16.msra.mxu0 %v495_v7  ;;  %v510_v31 = vpack.c.bf16 %v217_v27, %v216_v26  ;;  %v513_v36 = vpack.c.bf16 %v219_v34, %v218_v33  ;;  %v303_v37 = vld [vmem:[%s688_s7 + $0x18] sm:$0xff]  ;;  %v409_v39 = vld [vmem:[%s691_s4] ss:$0 sm:$0xff] }
   0x9   :  { %497 = vmatprep.subr.bf16.mxu0 %v526_v0  ;;  %508 = vmatpush3.bf16.msra.mxu1 %v507_v20  ;;  %v519_v38 = vpack.c.bf16 %v303_v37, %v302_v35  ;;  %v413_v45 = vld [vmem:[%s692_s8] ss:$0 sm:$0xff] }
   0xa   :  { %509 = vmatprep.subr.bf16.mxu1 %v526_v0  ;;  %v381_v46 = vld [vmem:[%s693_s9] sm:$0xff] }
   0xb   :  { %v393_v52 = vmul.f32 %v381_v46, %v381_v46  ;;  %v411_v57 = vld [vmem:[%s694_s6] ss:$0 sm:$0xff] }
   0xc   :  { %499 = vmatpush3.bf16.msra.mxu0 %v498_v13 }
   0xd   :  { %500 = vmatprep.subr.bf16.mxu0 %v526_v0  ;;  %v394_v56 = vsel %vm387_vm5, %v393_v52, 0.0 }
  0x10   :  { %502 = vmatpush3.bf16.msra.mxu0 %v501_v16 }
  0x11   :  { %515 = vmatprep.subr.bf16.mxu0 %v526_v0 }
  0x13   :  { %456 = vmatmul.mubr.msk.f32.vlgmr.msra.gmra.mrb[0].mxu0 %vm51_vm1, %v35_v17 }
  0x14   :  { %488 = vmatprep.mubr.msk.f32.mxu0 %vm527_vm0, %v528_v4  ;;  %517 = vmatpush3.bf16.msra.mxu0 %v516_v23 }
  0x15   :  { %518 = vmatprep.subr.bf16.mxu0 %v526_v0 }
  0x18   :  { %520 = vmatpush3.bf16.msra.mxu0 %v519_v38 }
  0xe6   :  { %v121_v25 = vpop.f32.mrb[0].mxu0 }
  0xe7   :  { %v122_v28 = vadd.f32 %v407_v24, %v121_v25  ;;  %v457_v29 = vpop.f32.mrb[1].mxu0 }
  0xe9   :  { %vm125_vm2 = vcmp.gt.f32.partialorder %v122_v28, 0.0  ;;  %v126_v30 = vmul.f32 0.01, %v122_v28 }
  0xeb   :  { %v127_v32 = vsel %vm125_vm2, %v122_v28, %v126_v30 }
  0xec   :  { %467 = vmatmul.mubr.msk.f32.vlgmr.msra.gmra.mrb[0].mxu1 %vm139_vm3, %v127_v32 }
  0xed   :  { %511 = vmatpush3.bf16.msra.mxu1 %v510_v31  ;;  %477 = vmatprep.mubr.msk.f32.mxu1 %vm527_vm0, %v528_v4 }
  0xee   :  { %512 = vmatprep.subr.bf16.mxu1 %v526_v0 }
  0xf1   :  { %514 = vmatpush3.bf16.msra.mxu1 %v513_v36 }
 0x1bf   :  { %v209_v40 = vpop.f32.mrb[0].mxu1 }
 0x1c0   :  { %v210_v41 = vadd.f32 %v409_v39, %v209_v40  ;;  %v468_v42 = vpop.f32.mrb[1].mxu1 }
 0x1c2   :  { %vm213_vm4 = vcmp.gt.f32.partialorder %v210_v41, 0.0  ;;  %v214_v43 = vmul.f32 0.01, %v210_v41 }
 0x1c4   :  { %v215_v44 = vsel %vm213_vm4, %v210_v41, %v214_v43 }
 0x1c5   :  { %478 = vmatmul.mubr.msk.f32.vlgmr.msra.gmra.mrb[2].mxu1 %vm139_vm3, %v215_v44  ;;  %489 = vmatmul.mubr.msk.f32.vlgmr.msra.gmra.mrb[2].mxu0 %vm139_vm3, %v215_v44 }
 0x298   :  { %v296_v47 = vpop.f32.mrb[2].mxu1  ;;  %v377_v48 = vpop.f32.mrb[2].mxu0 }
 0x299   :  { %v378_v49 = vadd.f32 %v413_v45, %v377_v48  ;;  %v479_v50 = vpop.f32.mrb[3].mxu1  ;;  %v490_v51 = vpop.f32.mrb[3].mxu0  ;;  %v297_v59 = vadd.f32 %v411_v57, %v296_v47 }
 0x29b   :  { %v382_v53 = vmul.f32 0.5, %v378_v49  ;;  %v388_v54 = vsel %vm387_vm5, %v378_v49, 0.0 }
 0x29c   :  { %389 = vadd.xlane.f32.xlu0 %v388_v54 }
 0x29d   :  { %v383_v55 = vmul.f32 1.442695, %v382_v53 }
 0x29f   :  { %524 = vpow2.f32 %v383_v55 }
 0x2a0   :  { %395 = vadd.xlane.f32.xlu0 %v394_v56 }
 0x2a9   :  { %v525_v58 = vpop.eup %524 }
 0x2aa   :  { %v385_v60 = vmul.f32 %v525_v58, %v381_v46 }
 0x2ac   :  { %v386_v61 = vadd.f32 %v385_v60, %v297_v59 }
 0x329   :  { %v390_v62 = vpop.xlane.xlu0 %389 }
 0x32a   :  { %v391_v63 = vmul.f32 0.5, %v390_v62 }
 0x32c   :  { %v392_v1 = vsub.f32 -7.351508, %v391_v63 }
 0x32d   :  { %v396_v0 = vpop.xlane.xlu0 %395 }
 0x32e   :  { %v397_v2 = vmul.f32 0.5, %v396_v0 }
 0x330   :  { %v398_v3 = vsub.f32 %v392_v1, %v397_v2 }
 0x332   :  { %v399_v4 = vsel %vm387_vm5, %v386_v61, %v398_v3 }
 0x333   :  { %v401_v5 = vsel %vm400_vm6, %v399_v4, 0.0 }
 0x334   :  { %402 = vst [vmem:[%s695_s10] sm:$0xff] %v401_v5 }

</bundles_post_ra>
